<compile_context>
chip_gen: v7x
topology: tpu7x:2x2x1
jax: 0.10.0
libtpu: 0.0.40
codegen_flags: <defaults>
</compile_context>

<pallas_src>
import jax
import jax.numpy as jnp
from jax.experimental import pallas as pl
from jax.experimental.pallas import tpu as pltpu


def _round_up(x, m):
    return ((x + m - 1) // m) * m


# ---------------------------------------------------------------------------
# Pallas kernel: single folded matmul  o = x @ Wf   (Wf = W1^T W2^T W3^T)
# ---------------------------------------------------------------------------
def _folded_linear_kernel(x_ref, w_ref, o_ref):
    # x tile streamed in its original dtype (f32); cast to bf16 in VMEM so the
    # matmul runs MXU-native with f32 accumulation.  Weight tile is constant
    # across batch tiles (index_map -> (0, 0)) and stays VMEM-resident.
    x = x_ref[...].astype(w_ref.dtype)
    o_ref[...] = jnp.dot(
        x, w_ref[...], preferred_element_type=jnp.float32
    ).astype(o_ref.dtype)


# ---------------------------------------------------------------------------
# LinearNet3L in JAX, parameters initialized in-script (deterministic)
# ---------------------------------------------------------------------------
class LinearNet3LPallas:
    def __init__(self, d_input, d_output=1, d_hidden=100, scaling='sqrt',
                 bias=False, seed=0, mxu_dtype=jnp.bfloat16, out_dtype=jnp.float32):
        assert not bias, "LinearNet3L default is bias=False; bias not implemented"
        # TODO(synk): layer_type / drop_l layer-variant selection (Dropout/DropConnect)
        # is not implemented; only the default nn.Linear path is translated.
        self.dims = [d_input, d_hidden, d_hidden, d_output]
        self.n_layers = 3
        self.d_output = d_output
        self.mxu_dtype = mxu_dtype
        self.out_dtype = out_dtype

        # --- Net.init_weights(scaling): W ~ N(0, scaling_f(f_in)), f_in = in_features
        # (JAX PRNG used instead of torch.manual_seed(1871); same distribution.)
        if scaling == 'lin':
            scaling_f = lambda f_in: 1.0 / f_in
        elif scaling == 'sqrt':
            scaling_f = lambda f_in: 1.0 / (f_in ** 0.5)
        elif scaling == 'const':
            scaling_f = lambda f_in: 0.001
        elif isinstance(scaling, float) and scaling > 0:
            scaling_f = lambda f_in: 1.0 / (f_in ** scaling)
        else:
            raise ValueError(f"Invalid scaling option '{scaling}'")

        key = jax.random.PRNGKey(seed)
        self.weights = []  # PyTorch-style (out_features, in_features), f32 (reference)
        for l in range(self.n_layers):
            key, sub = jax.random.split(key)
            std = scaling_f(float(self.dims[l]))
            w = jax.random.normal(
                sub, (self.dims[l + 1], self.dims[l]), jnp.float32) * std
            self.weights.append(w)

        # --- Fold the activation-free chain into ONE matrix, in f32, at init.
        #     x @ W1^T @ W2^T @ W3^T  ==  x @ Wf,  Wf: (d_input, d_output)
        wf = self.weights[0].T
        for w in self.weights[1:]:
            wf = wf @ w.T
        self.w_folded = wf.astype(mxu_dtype)          # single bf16 cast, done once

        self._forward_jit = jax.jit(self._forward_impl)

    # -- jitted forward implementation (pallas_call built at trace time) --
    def _forward_impl(self, x, w_folded):
        B, d_in = x.shape
        d_out = self.d_output

        # Batch tile: sublane-aligned (multiple of 8), capped at 1024 rows to
        # amortize per-grid-step overhead; multi-tile grids shard across TCs.
        TB = min(_round_up(B, 8), 1024)
        grid = (pl.cdiv(B, TB),)

        itemsize = jnp.dtype(x.dtype).itemsize
        cost = pl.CostEstimate(
            flops=2 * B * d_in * d_out,
            transcendentals=0,
            bytes_accessed=(B * d_in * itemsize
                            + B * d_out * jnp.dtype(self.out_dtype).itemsize
                            + d_in * d_out * jnp.dtype(self.mxu_dtype).itemsize),
        )

        out = pl.pallas_call(
            _folded_linear_kernel,
            out_shape=jax.ShapeDtypeStruct((B, d_out), self.out_dtype),
            grid_spec=pl.GridSpec(
                grid=grid,
                in_specs=[
                    # x: last dim == full array dim (lane constraint satisfied),
                    # no wrapper-side pad/cast, ragged last tile handled by Pallas.
                    pl.BlockSpec((TB, d_in), lambda i: (i, 0)),
                    # folded weight: whole (tiny) array, VMEM-resident across tiles.
                    pl.BlockSpec((d_in, d_out), lambda i: (0, 0)),
                ],
                out_specs=pl.BlockSpec((TB, d_out), lambda i: (i, 0)),
            ),
            compiler_params=pltpu.CompilerParams(
                dimension_semantics=("parallel",)),   # batch tiles shard across TCs
            cost_estimate=cost,
        )(x, w_folded)

        return out

    def __call__(self, x, hidden_layer=False):
        return self.forward(x, hidden_layer)

    def forward(self, x, hidden_layer=False):
        if hidden_layer:
            # TODO(synk): hidden_layer=True (returning (out, [h1, h2])) is not wired
            # into the folded single-matmul path.
            raise NotImplementedError("hidden_layer=True not implemented")
        return self._forward_jit(x, self.w_folded)

    # Pure-JAX f32 reference (verification only; not part of the kernel path).
    def reference(self, x):
        h = x.astype(jnp.float32)
        for w in self.weights:
            h = h @ w.T
        return h.astype(self.out_dtype)


if __name__ == "__main__":
    # Small shapes consistent with the module (d_hidden default = 100).
    batch, d_input, d_hidden, d_output = 8, 32, 100, 4

    net = LinearNet3LPallas(
        d_input=d_input,
        d_output=d_output,
        d_hidden=d_hidden,
        scaling='sqrt',
        bias=False,
        seed=0,
    )

    key = jax.random.PRNGKey(0)
    x = jax.random.normal(key, (batch, d_input), jnp.float32)

    out = jax.block_until_ready(net(x))

    ref = net.reference(x)
    assert out.shape == (batch, d_output)
    # bf16 folded weight + bf16 x vs a pure-f32 reference -> loosened tolerance.
    assert jnp.allclose(out, ref, atol=5e-2, rtol=5e-2), "mismatch vs reference"

    print("KERNEL_OK")
</pallas_src>

<mosaic_0001>
module attributes {stable_mosaic.version = 11 : i64} {
  func.func @_folded_linear_kernel(%arg0: i32, %arg1: memref<8x32xf32, #tpu.memory_space<vmem>>, %arg2: memref<32x4xbf16, #tpu.memory_space<vmem>>, %arg3: memref<8x4xf32, #tpu.memory_space<vmem>>) attributes {dimension_semantics = [#tpu.dimension_semantics<parallel>], iteration_bounds = array<i64: 1>, scalar_prefetch = 0 : i64, scratch_operands = 0 : i64, tpu.core_type = #tpu.core_type<tc>, window_params = [{transform_indices = @transform_0, window_bounds = array<i64: 8, 32>}, {pipeline_mode = #tpu.pipeline_mode<synchronous>, transform_indices = @transform_1, window_bounds = array<i64: 32, 4>}, {transform_indices = @transform_2, window_bounds = array<i64: 8, 4>}]} {
    %c0 = arith.constant 0 : index
    %c0_0 = arith.constant 0 : index
    %0 = vector.load %arg1[%c0, %c0_0] : memref<8x32xf32, #tpu.memory_space<vmem>>, vector<8x32xf32>
    %1 = arith.truncf %0 : vector<8x32xf32> to vector<8x32xbf16>
    %c0_1 = arith.constant 0 : index
    %c0_2 = arith.constant 0 : index
    %2 = vector.load %arg2[%c0_1, %c0_2] : memref<32x4xbf16, #tpu.memory_space<vmem>>, vector<32x4xbf16>
    %cst = arith.constant dense<0.000000e+00> : vector<8x4xf32>
    %3 = tpu.matmul %1, %2, %cst {dimension_numbers = #tpu.dot_dimension_numbers<[1], [0], [0], [1], [0, 0, 1, 1], [], []>} : vector<8x32xbf16>, vector<32x4xbf16>, vector<8x4xf32> -> vector<8x4xf32>
    %c0_3 = arith.constant 0 : index
    %c0_4 = arith.constant 0 : index
    %4 = vector.load %arg3[%c0_3, %c0_4] : memref<8x4xf32, #tpu.memory_space<vmem>>, vector<8x4xf32>
    tpu.vector_store %arg3[%c0_3, %c0_4], %3 {strides = array<i32>} : memref<8x4xf32, #tpu.memory_space<vmem>>, vector<8x4xf32>,
    return
  }
  func.func @transform_0(%arg0: i32) -> (i32, i32) {
    %c0_i32 = arith.constant 0 : i32
    %c0_i32_0 = arith.constant 0 : i32
    return %arg0, %c0_i32 : i32, i32
  }
  func.func @transform_1(%arg0: i32) -> (i32, i32) {
    %c0_i32 = arith.constant 0 : i32
    %c0_i32_0 = arith.constant 0 : i32
    %c0_i32_1 = arith.constant 0 : i32
    return %c0_i32, %c0_i32_0 : i32, i32
  }
  func.func @transform_2(%arg0: i32) -> (i32, i32) {
    %c0_i32 = arith.constant 0 : i32
    %c0_i32_0 = arith.constant 0 : i32
    return %arg0, %c0_i32 : i32, i32
  }
}

</mosaic_0001>

<bundles_post_ra>
// kernel: _forward_impl.1
= control target key start
LH: loop header
LB: loop body
LE: loop exit
PB: predicated region body
PF: predicated region fallthrough
CT: control target
= control target key end

     0   :  { %v98_v0 = vmov 0.0   ;;  %vm99_vm0 = vmmov 0   ;;  %vm30_vm1 = vcmask 261120   ;;  %vm74_vm2 = vcmask 31744   ;;  %s127_s1 = inlined_call_operand.vmem [shape: bf16[32,4], index: 1, kind: input, shape index: {}]   ;;  %s128_s0 = inlined_call_operand.vmem [shape: f32[8,32], index: 0, kind: input, shape index: {}]   ;;  %s129_s2 = inlined_call_operand.vmem [shape: f32[8,4], index: 2, kind: output, shape index: {}]  }
   0x1   :  { %86 = vmatprep.subr.bf16.mxu0 %v98_v0  ;;  %v96_v1 = vld [vmem:[%s127_s1] sm:$0xff]   ;;  %90 = vmatprep.mubr.msk.bf16.mxu0 %vm99_vm0, %v98_v0  ;;  %v97_v2 = vld [vmem:[%s127_s1 + $0x8] sm:$0xff]  }
   0x2   :  { %87 = vmatpush3.bf16.msra.mxu0 %v96_v1  ;;  %v12_v3 = vld [vmem:[%s128_s0] sm:$0xff] }
   0x3   :  { %88 = vmatprep.subr.bf16.mxu0 %v98_v0  ;;  %v13_v4 = vpack.c.bf16 %v12_v3, %v12_v3 }
   0x6   :  { %89 = vmatpush3.bf16.msra.mxu0 %v97_v2 }
   0x9   :  { %91 = vmatmul.mubr.msk.bf16.vlgmr.msra.gmra.mrb[0].mxu0 %vm30_vm1, %v13_v4 }
  0xdc   :  { %v68_v5 = vpop.f32.mrb[0].mxu0 }
  0xdd   :  { %75 = vst.msk [vmem:[%s129_s2] sm:$0xff] %vm74_vm2, %v68_v5  ;;  %v92_v6 = vpop.f32.mrb[1].mxu0 }
  0xde   :  { %v71_v7 = vpop.f32.mrb[2].mxu0 }
  0xdf   :  { %v93_v8 = vpop.f32.mrb[3].mxu0 }

</bundles_post_ra>
